<compile_context>
chip_gen: v6e
topology: v6e:2x2x1
jax: 0.10.0
libtpu: 0.0.40
codegen_flags: <defaults>
</compile_context>

<pallas_src>
import functools

import jax
import jax.numpy as jnp
from jax.experimental import pallas as pl
from jax.experimental.pallas import tpu as pltpu


def _conv_softsign_kernel(x_ref, w_ref, b_ref, o_ref, *, f, s, Wp, Ho, Wo):
    """One grid step == one image.

    x_ref: (C, L)            bf16, flattened zero-padded image (+ tail zeros)
    w_ref: (f*f, out_ch, C)  bf16, per-tap weight matrices
    b_ref: (out_ch, 1)       f32
    o_ref: (out_ch, Ho*Wo)   output dtype, final NCHW-flat layout
    """
    out_ch = o_ref.shape[0]
    Mq = Ho * Wp  # over-computed flat domain; columns wo >= Wo per row are garbage

    # f*f-tap reduction accumulated in f32 on-chip — no im2col matrix in HBM.
    x_full = None if s == 1 else x_ref[...]
    acc = jnp.zeros((out_ch, Mq), jnp.float32)
    for ki in range(f):
        for kj in range(f):
            off = ki * Wp + kj
            if s == 1:
                xs = x_ref[:, off:off + Mq]                     # (C, Mq) contiguous
            else:
                xs = x_full[:, off:off + s * (Mq - 1) + 1:s]    # (C, Mq) strided
            acc = acc + jnp.dot(w_ref[ki * f + kj], xs,
                                preferred_element_type=jnp.float32)

    y = acc + b_ref[...]                      # (out_ch, Mq) + (out_ch, 1) broadcast
    # Softsign with the exact divide (DMA-bound kernel: exact costs nothing).
    y = (y / (1.0 + jnp.abs(y))).astype(o_ref.dtype)

    # Drop the (Wp - Wo) garbage columns of each over-computed row on-chip and
    # pack the valid (out_ch, Wo) row slabs densely: the output leaves the
    # kernel already in final layout -> no post-kernel slice/transpose.
    for r in range(Ho):
        o_ref[:, r * Wo:(r + 1) * Wo] = y[:, r * Wp:r * Wp + Wo]


def _vmem_limit_bytes():
    """Generation-aware VMEM budget (v7x: 64 MiB physical; v5e/v6e: 128 MiB)."""
    try:
        cap = int(pltpu.get_tpu_info().vmem_capacity_bytes)
    except Exception:
        cap = 64 * 1024 * 1024
    return max(32 * 1024 * 1024, min((cap * 3) // 4, 96 * 1024 * 1024))


@functools.partial(jax.jit, static_argnames=("f", "s", "p"))
def conv_act(x, weight, bias, *, f, s, p):
    """torch equivalent: Softsign(Conv2d(in_ch, out_ch, f, stride=s, padding=p)(x)).

    x: [N, in_ch, H, W], weight: [out_ch, in_ch, f, f], bias: [out_ch].
    Returns: [N, out_ch, Ho, Wo] (NCHW, matching PyTorch).
    """
    N, C, H, W = x.shape
    out_ch = weight.shape[0]
    Hp, Wp = H + 2 * p, W + 2 * p
    Ho = (Hp - f) // s + 1
    Wo = (Wp - f) // s + 1
    Mq = Ho * Wp
    # Flat elements any tap slice may touch (garbage columns of the
    # over-computed domain read trailing zero padding, never OOB).
    need = (f - 1) * (Wp + 1) + s * (Mq - 1) + 1
    extra_rows = max(0, -(-(need - Hp * Wp) // Wp))
    L = (Hp + extra_rows) * Wp

    # Single zero-pad (conv padding + a few tail rows) — the only producer in
    # front of the kernel; ~input-sized, fusible via allow_input_fusion.
    xp = jnp.pad(x, ((0, 0), (0, 0), (p, p + extra_rows), (p, p)))
    xf = xp.reshape(N, C, L).astype(jnp.bfloat16)          # bf16 stream, f32 acc

    # (out_ch, C, f, f) -> (f*f, out_ch, C): tiny weight transpose in HBM.
    wt = jnp.transpose(weight.reshape(out_ch, C, f * f), (2, 0, 1)).astype(jnp.bfloat16)
    b2 = bias.reshape(out_ch, 1).astype(jnp.float32)

    kernel = functools.partial(_conv_softsign_kernel, f=f, s=s, Wp=Wp, Ho=Ho, Wo=Wo)

    out_flat = pl.pallas_call(
        kernel,
        out_shape=jax.ShapeDtypeStruct((N, out_ch, Ho * Wo), x.dtype),
        grid_spec=pltpu.PrefetchScalarGridSpec(
            num_scalar_prefetch=0,
            grid=(N,),                                            # one image / step
            in_specs=[
                pl.BlockSpec((None, C, L), lambda n: (n, 0, 0)),        # image, read once
                pl.BlockSpec((f * f, out_ch, C), lambda n: (0, 0, 0)),  # resident weights
                pl.BlockSpec((out_ch, 1), lambda n: (0, 0)),            # resident bias
            ],
            out_specs=pl.BlockSpec((None, out_ch, Ho * Wo), lambda n: (n, 0, 0)),
        ),
        compiler_params=pltpu.CompilerParams(
            dimension_semantics=("parallel",),        # batch shards across v7x's 2 TCs
            allow_input_fusion=[True, False, False],  # let the pad fuse into the stream
            vmem_limit_bytes=_vmem_limit_bytes(),
        ),
        cost_estimate=pl.CostEstimate(
            flops=2 * N * out_ch * C * f * f * Ho * Wo,
            transcendentals=N * out_ch * Ho * Wo,     # softsign reciprocal
            bytes_accessed=(N * C * L * 2 + f * f * out_ch * C * 2 + out_ch * 4
                            + N * out_ch * Ho * Wo * x.dtype.itemsize),
        ),
    )(xf, wt, b2)

    # Contiguous split is free: already the final NCHW layout.
    return out_flat.reshape(N, out_ch, Ho, Wo)


def _reference_conv_act(x, weight, bias, *, f, s, p):
    y = jax.lax.conv_general_dilated(
        x, weight, window_strides=(s, s), padding=[(p, p), (p, p)],
        dimension_numbers=("NCHW", "OIHW", "NCHW"))
    y = y + bias.reshape(1, -1, 1, 1)
    return y / (1.0 + jnp.abs(y))


if __name__ == "__main__":
    # ConvAct(in_ch=4, out_ch=8, f=3, s=1, p=1) on x: [2, 4, 16, 16]
    N, in_ch, H, W = 2, 4, 16, 16
    out_ch, f, s, p = 8, 3, 1, 1

    key = jax.random.PRNGKey(0)
    kx, kw, kb = jax.random.split(key, 3)

    x = jax.random.normal(kx, (N, in_ch, H, W), dtype=jnp.float32)
    # Deterministic init mimicking nn.Conv2d's kaiming-uniform bound.
    fan_in = in_ch * f * f
    bound = 1.0 / (fan_in ** 0.5)
    weight = jax.random.uniform(kw, (out_ch, in_ch, f, f),
                                minval=-bound, maxval=bound, dtype=jnp.float32)
    bias = jax.random.uniform(kb, (out_ch,),
                              minval=-bound, maxval=bound, dtype=jnp.float32)

    out = conv_act(x, weight, bias, f=f, s=s, p=p)
    out = jax.block_until_ready(out)

    Ho = (H + 2 * p - f) // s + 1
    Wo = (W + 2 * p - f) // s + 1
    assert out.shape == (N, out_ch, Ho, Wo), out.shape

    ref = _reference_conv_act(x, weight, bias, f=f, s=s, p=p)
    # Tolerance reflects the deliberate bf16 streaming of x/W (review item #2);
    # accumulation, bias add and the Softsign divide are exact f32.
    err = float(jnp.max(jnp.abs(out - ref)))
    assert jnp.allclose(out, ref, atol=2e-2, rtol=2e-2), f"mismatch vs reference: {err}"

    print("KERNEL_OK")
</pallas_src>

<mosaic_0001>
module attributes {stable_mosaic.version = 11 : i64} {
  func.func @_conv_softsign_kernel(%arg0: i32, %arg1: memref<1x4x342xbf16, #tpu.memory_space<vmem>>, %arg2: memref<9x8x4xbf16, #tpu.memory_space<vmem>>, %arg3: memref<8x1xf32, #tpu.memory_space<vmem>>, %arg4: memref<1x8x256xf32, #tpu.memory_space<vmem>>) attributes {dimension_semantics = [#tpu.dimension_semantics<parallel>], iteration_bounds = array<i64: 2>, scalar_prefetch = 0 : i64, scratch_operands = 0 : i64, tpu.core_type = #tpu.core_type<tc>, window_params = [{transform_indices = @transform_0, window_bounds = array<i64: 1, 4, 342>}, {pipeline_mode = #tpu.pipeline_mode<synchronous>, transform_indices = @transform_1, window_bounds = array<i64: 9, 8, 4>}, {pipeline_mode = #tpu.pipeline_mode<synchronous>, transform_indices = @transform_2, window_bounds = array<i64: 8, 1>}, {transform_indices = @transform_3, window_bounds = array<i64: 1, 8, 256>}]} {
    %cst = arith.constant 0.000000e+00 : f32
    %0 = vector.broadcast %cst : f32 to vector<8x288xf32>
    %c0 = arith.constant 0 : index
    %c0_0 = arith.constant 0 : index
    %c0_1 = arith.constant 0 : index
    %1 = vector.load %arg1[%c0, %c0_0, %c0_1] : memref<1x4x342xbf16, #tpu.memory_space<vmem>>, vector<1x4x288xbf16>
    %2 = vector.shape_cast %1 : vector<1x4x288xbf16> to vector<4x288xbf16>
    %c0_2 = arith.constant 0 : index
    %c0_3 = arith.constant 0 : index
    %c0_4 = arith.constant 0 : index
    %3 = vector.load %arg2[%c0_2, %c0_3, %c0_4] : memref<9x8x4xbf16, #tpu.memory_space<vmem>>, vector<1x8x4xbf16>
    %4 = vector.shape_cast %3 : vector<1x8x4xbf16> to vector<8x4xbf16>
    %cst_5 = arith.constant dense<0.000000e+00> : vector<8x288xf32>
    %5 = tpu.matmul %4, %2, %cst_5 {dimension_numbers = #tpu.dot_dimension_numbers<[1], [0], [0], [1], [0, 0, 1, 1], [], []>} : vector<8x4xbf16>, vector<4x288xbf16>, vector<8x288xf32> -> vector<8x288xf32>
    %6 = arith.addf %0, %5 : vector<8x288xf32>
    %c0_6 = arith.constant 0 : index
    %c0_7 = arith.constant 0 : index
    %c1 = arith.constant 1 : index
    %7 = vector.load %arg1[%c0_6, %c0_7, %c1] : memref<1x4x342xbf16, #tpu.memory_space<vmem>>, vector<1x4x288xbf16>
    %8 = vector.shape_cast %7 : vector<1x4x288xbf16> to vector<4x288xbf16>
    %c1_8 = arith.constant 1 : index
    %c0_9 = arith.constant 0 : index
    %c0_10 = arith.constant 0 : index
    %9 = vector.load %arg2[%c1_8, %c0_9, %c0_10] : memref<9x8x4xbf16, #tpu.memory_space<vmem>>, vector<1x8x4xbf16>
    %10 = vector.shape_cast %9 : vector<1x8x4xbf16> to vector<8x4xbf16>
    %cst_11 = arith.constant dense<0.000000e+00> : vector<8x288xf32>
    %11 = tpu.matmul %10, %8, %cst_11 {dimension_numbers = #tpu.dot_dimension_numbers<[1], [0], [0], [1], [0, 0, 1, 1], [], []>} : vector<8x4xbf16>, vector<4x288xbf16>, vector<8x288xf32> -> vector<8x288xf32>
    %12 = arith.addf %6, %11 : vector<8x288xf32>
    %c0_12 = arith.constant 0 : index
    %c0_13 = arith.constant 0 : index
    %c2 = arith.constant 2 : index
    %13 = vector.load %arg1[%c0_12, %c0_13, %c2] : memref<1x4x342xbf16, #tpu.memory_space<vmem>>, vector<1x4x288xbf16>
    %14 = vector.shape_cast %13 : vector<1x4x288xbf16> to vector<4x288xbf16>
    %c2_14 = arith.constant 2 : index
    %c0_15 = arith.constant 0 : index
    %c0_16 = arith.constant 0 : index
    %15 = vector.load %arg2[%c2_14, %c0_15, %c0_16] : memref<9x8x4xbf16, #tpu.memory_space<vmem>>, vector<1x8x4xbf16>
    %16 = vector.shape_cast %15 : vector<1x8x4xbf16> to vector<8x4xbf16>
    %cst_17 = arith.constant dense<0.000000e+00> : vector<8x288xf32>
    %17 = tpu.matmul %16, %14, %cst_17 {dimension_numbers = #tpu.dot_dimension_numbers<[1], [0], [0], [1], [0, 0, 1, 1], [], []>} : vector<8x4xbf16>, vector<4x288xbf16>, vector<8x288xf32> -> vector<8x288xf32>
    %18 = arith.addf %12, %17 : vector<8x288xf32>
    %c0_18 = arith.constant 0 : index
    %c0_19 = arith.constant 0 : index
    %c18 = arith.constant 18 : index
    %19 = vector.load %arg1[%c0_18, %c0_19, %c18] : memref<1x4x342xbf16, #tpu.memory_space<vmem>>, vector<1x4x288xbf16>
    %20 = vector.shape_cast %19 : vector<1x4x288xbf16> to vector<4x288xbf16>
    %c3 = arith.constant 3 : index
    %c0_20 = arith.constant 0 : index
    %c0_21 = arith.constant 0 : index
    %21 = vector.load %arg2[%c3, %c0_20, %c0_21] : memref<9x8x4xbf16, #tpu.memory_space<vmem>>, vector<1x8x4xbf16>
    %22 = vector.shape_cast %21 : vector<1x8x4xbf16> to vector<8x4xbf16>
    %cst_22 = arith.constant dense<0.000000e+00> : vector<8x288xf32>
    %23 = tpu.matmul %22, %20, %cst_22 {dimension_numbers = #tpu.dot_dimension_numbers<[1], [0], [0], [1], [0, 0, 1, 1], [], []>} : vector<8x4xbf16>, vector<4x288xbf16>, vector<8x288xf32> -> vector<8x288xf32>
    %24 = arith.addf %18, %23 : vector<8x288xf32>
    %c0_23 = arith.constant 0 : index
    %c0_24 = arith.constant 0 : index
    %c19 = arith.constant 19 : index
    %25 = vector.load %arg1[%c0_23, %c0_24, %c19] : memref<1x4x342xbf16, #tpu.memory_space<vmem>>, vector<1x4x288xbf16>
    %26 = vector.shape_cast %25 : vector<1x4x288xbf16> to vector<4x288xbf16>
    %c4 = arith.constant 4 : index
    %c0_25 = arith.constant 0 : index
    %c0_26 = arith.constant 0 : index
    %27 = vector.load %arg2[%c4, %c0_25, %c0_26] : memref<9x8x4xbf16, #tpu.memory_space<vmem>>, vector<1x8x4xbf16>
    %28 = vector.shape_cast %27 : vector<1x8x4xbf16> to vector<8x4xbf16>
    %cst_27 = arith.constant dense<0.000000e+00> : vector<8x288xf32>
    %29 = tpu.matmul %28, %26, %cst_27 {dimension_numbers = #tpu.dot_dimension_numbers<[1], [0], [0], [1], [0, 0, 1, 1], [], []>} : vector<8x4xbf16>, vector<4x288xbf16>, vector<8x288xf32> -> vector<8x288xf32>
    %30 = arith.addf %24, %29 : vector<8x288xf32>
    %c0_28 = arith.constant 0 : index
    %c0_29 = arith.constant 0 : index
    %c20 = arith.constant 20 : index
    %31 = vector.load %arg1[%c0_28, %c0_29, %c20] : memref<1x4x342xbf16, #tpu.memory_space<vmem>>, vector<1x4x288xbf16>
    %32 = vector.shape_cast %31 : vector<1x4x288xbf16> to vector<4x288xbf16>
    %c5 = arith.constant 5 : index
    %c0_30 = arith.constant 0 : index
    %c0_31 = arith.constant 0 : index
    %33 = vector.load %arg2[%c5, %c0_30, %c0_31] : memref<9x8x4xbf16, #tpu.memory_space<vmem>>, vector<1x8x4xbf16>
    %34 = vector.shape_cast %33 : vector<1x8x4xbf16> to vector<8x4xbf16>
    %cst_32 = arith.constant dense<0.000000e+00> : vector<8x288xf32>
    %35 = tpu.matmul %34, %32, %cst_32 {dimension_numbers = #tpu.dot_dimension_numbers<[1], [0], [0], [1], [0, 0, 1, 1], [], []>} : vector<8x4xbf16>, vector<4x288xbf16>, vector<8x288xf32> -> vector<8x288xf32>
    %36 = arith.addf %30, %35 : vector<8x288xf32>
    %c0_33 = arith.constant 0 : index
    %c0_34 = arith.constant 0 : index
    %c36 = arith.constant 36 : index
    %37 = vector.load %arg1[%c0_33, %c0_34, %c36] : memref<1x4x342xbf16, #tpu.memory_space<vmem>>, vector<1x4x288xbf16>
    %38 = vector.shape_cast %37 : vector<1x4x288xbf16> to vector<4x288xbf16>
    %c6 = arith.constant 6 : index
    %c0_35 = arith.constant 0 : index
    %c0_36 = arith.constant 0 : index
    %39 = vector.load %arg2[%c6, %c0_35, %c0_36] : memref<9x8x4xbf16, #tpu.memory_space<vmem>>, vector<1x8x4xbf16>
    %40 = vector.shape_cast %39 : vector<1x8x4xbf16> to vector<8x4xbf16>
    %cst_37 = arith.constant dense<0.000000e+00> : vector<8x288xf32>
    %41 = tpu.matmul %40, %38, %cst_37 {dimension_numbers = #tpu.dot_dimension_numbers<[1], [0], [0], [1], [0, 0, 1, 1], [], []>} : vector<8x4xbf16>, vector<4x288xbf16>, vector<8x288xf32> -> vector<8x288xf32>
    %42 = arith.addf %36, %41 : vector<8x288xf32>
    %c0_38 = arith.constant 0 : index
    %c0_39 = arith.constant 0 : index
    %c37 = arith.constant 37 : index
    %43 = vector.load %arg1[%c0_38, %c0_39, %c37] : memref<1x4x342xbf16, #tpu.memory_space<vmem>>, vector<1x4x288xbf16>
    %44 = vector.shape_cast %43 : vector<1x4x288xbf16> to vector<4x288xbf16>
    %c7 = arith.constant 7 : index
    %c0_40 = arith.constant 0 : index
    %c0_41 = arith.constant 0 : index
    %45 = vector.load %arg2[%c7, %c0_40, %c0_41] : memref<9x8x4xbf16, #tpu.memory_space<vmem>>, vector<1x8x4xbf16>
    %46 = vector.shape_cast %45 : vector<1x8x4xbf16> to vector<8x4xbf16>
    %cst_42 = arith.constant dense<0.000000e+00> : vector<8x288xf32>
    %47 = tpu.matmul %46, %44, %cst_42 {dimension_numbers = #tpu.dot_dimension_numbers<[1], [0], [0], [1], [0, 0, 1, 1], [], []>} : vector<8x4xbf16>, vector<4x288xbf16>, vector<8x288xf32> -> vector<8x288xf32>
    %48 = arith.addf %42, %47 : vector<8x288xf32>
    %c0_43 = arith.constant 0 : index
    %c0_44 = arith.constant 0 : index
    %c38 = arith.constant 38 : index
    %49 = vector.load %arg1[%c0_43, %c0_44, %c38] : memref<1x4x342xbf16, #tpu.memory_space<vmem>>, vector<1x4x288xbf16>
    %50 = vector.shape_cast %49 : vector<1x4x288xbf16> to vector<4x288xbf16>
    %c8 = arith.constant 8 : index
    %c0_45 = arith.constant 0 : index
    %c0_46 = arith.constant 0 : index
    %51 = vector.load %arg2[%c8, %c0_45, %c0_46] : memref<9x8x4xbf16, #tpu.memory_space<vmem>>, vector<1x8x4xbf16>
    %52 = vector.shape_cast %51 : vector<1x8x4xbf16> to vector<8x4xbf16>
    %cst_47 = arith.constant dense<0.000000e+00> : vector<8x288xf32>
    %53 = tpu.matmul %52, %50, %cst_47 {dimension_numbers = #tpu.dot_dimension_numbers<[1], [0], [0], [1], [0, 0, 1, 1], [], []>} : vector<8x4xbf16>, vector<4x288xbf16>, vector<8x288xf32> -> vector<8x288xf32>
    %54 = arith.addf %48, %53 : vector<8x288xf32>
    %c0_48 = arith.constant 0 : index
    %c0_49 = arith.constant 0 : index
    %55 = vector.load %arg3[%c0_48, %c0_49] : memref<8x1xf32, #tpu.memory_space<vmem>>, vector<8x1xf32>
    %56 = vector.broadcast %55 : vector<8x1xf32> to vector<8x288xf32>
    %57 = arith.addf %54, %56 : vector<8x288xf32>
    %58 = math.absf %57 : vector<8x288xf32>
    %cst_50 = arith.constant 1.000000e+00 : f32
    %59 = vector.broadcast %cst_50 : f32 to vector<8x288xf32>
    %60 = arith.addf %59, %58 : vector<8x288xf32>
    %61 = arith.divf %57, %60 : vector<8x288xf32>
    %62 = vector.extract_strided_slice %61 {offsets = [0, 0], sizes = [8, 16], strides = [1, 1]} : vector<8x288xf32> to vector<8x16xf32>
    %c0_51 = arith.constant 0 : index
    %c0_52 = arith.constant 0 : index
    %c0_53 = arith.constant 0 : index
    %63 = vector.load %arg4[%c0_51, %c0_52, %c0_53] : memref<1x8x256xf32, #tpu.memory_space<vmem>>, vector<1x8x16xf32>
    %64 = vector.shape_cast %63 : vector<1x8x16xf32> to vector<8x16xf32>
    %65 = vector.shape_cast %62 : vector<8x16xf32> to vector<1x8x16xf32>
    tpu.vector_store %arg4[%c0_51, %c0_52, %c0_53], %65 {strides = array<i32>} : memref<1x8x256xf32, #tpu.memory_space<vmem>>, vector<1x8x16xf32>,
    %66 = vector.extract_strided_slice %61 {offsets = [0, 18], sizes = [8, 16], strides = [1, 1]} : vector<8x288xf32> to vector<8x16xf32>
    %c0_54 = arith.constant 0 : index
    %c0_55 = arith.constant 0 : index
    %c16 = arith.constant 16 : index
    %67 = vector.load %arg4[%c0_54, %c0_55, %c16] : memref<1x8x256xf32, #tpu.memory_space<vmem>>, vector<1x8x16xf32>
    %68 = vector.shape_cast %67 : vector<1x8x16xf32> to vector<8x16xf32>
    %69 = vector.shape_cast %66 : vector<8x16xf32> to vector<1x8x16xf32>
    tpu.vector_store %arg4[%c0_54, %c0_55, %c16], %69 {strides = array<i32>} : memref<1x8x256xf32, #tpu.memory_space<vmem>>, vector<1x8x16xf32>,
    %70 = vector.extract_strided_slice %61 {offsets = [0, 36], sizes = [8, 16], strides = [1, 1]} : vector<8x288xf32> to vector<8x16xf32>
    %c0_56 = arith.constant 0 : index
    %c0_57 = arith.constant 0 : index
    %c32 = arith.constant 32 : index
    %71 = vector.load %arg4[%c0_56, %c0_57, %c32] : memref<1x8x256xf32, #tpu.memory_space<vmem>>, vector<1x8x16xf32>
    %72 = vector.shape_cast %71 : vector<1x8x16xf32> to vector<8x16xf32>
    %73 = vector.shape_cast %70 : vector<8x16xf32> to vector<1x8x16xf32>
    tpu.vector_store %arg4[%c0_56, %c0_57, %c32], %73 {strides = array<i32>} : memref<1x8x256xf32, #tpu.memory_space<vmem>>, vector<1x8x16xf32>,
    %74 = vector.extract_strided_slice %61 {offsets = [0, 54], sizes = [8, 16], strides = [1, 1]} : vector<8x288xf32> to vector<8x16xf32>
    %c0_58 = arith.constant 0 : index
    %c0_59 = arith.constant 0 : index
    %c48 = arith.constant 48 : index
    %75 = vector.load %arg4[%c0_58, %c0_59, %c48] : memref<1x8x256xf32, #tpu.memory_space<vmem>>, vector<1x8x16xf32>
    %76 = vector.shape_cast %75 : vector<1x8x16xf32> to vector<8x16xf32>
    %77 = vector.shape_cast %74 : vector<8x16xf32> to vector<1x8x16xf32>
    tpu.vector_store %arg4[%c0_58, %c0_59, %c48], %77 {strides = array<i32>} : memref<1x8x256xf32, #tpu.memory_space<vmem>>, vector<1x8x16xf32>,
    %78 = vector.extract_strided_slice %61 {offsets = [0, 72], sizes = [8, 16], strides = [1, 1]} : vector<8x288xf32> to vector<8x16xf32>
    %c0_60 = arith.constant 0 : index
    %c0_61 = arith.constant 0 : index
    %c64 = arith.constant 64 : index
    %79 = vector.load %arg4[%c0_60, %c0_61, %c64] : memref<1x8x256xf32, #tpu.memory_space<vmem>>, vector<1x8x16xf32>
    %80 = vector.shape_cast %79 : vector<1x8x16xf32> to vector<8x16xf32>
    %81 = vector.shape_cast %78 : vector<8x16xf32> to vector<1x8x16xf32>
    tpu.vector_store %arg4[%c0_60, %c0_61, %c64], %81 {strides = array<i32>} : memref<1x8x256xf32, #tpu.memory_space<vmem>>, vector<1x8x16xf32>,
    %82 = vector.extract_strided_slice %61 {offsets = [0, 90], sizes = [8, 16], strides = [1, 1]} : vector<8x288xf32> to vector<8x16xf32>
    %c0_62 = arith.constant 0 : index
    %c0_63 = arith.constant 0 : index
    %c80 = arith.constant 80 : index
    %83 = vector.load %arg4[%c0_62, %c0_63, %c80] : memref<1x8x256xf32, #tpu.memory_space<vmem>>, vector<1x8x16xf32>
    %84 = vector.shape_cast %83 : vector<1x8x16xf32> to vector<8x16xf32>
    %85 = vector.shape_cast %82 : vector<8x16xf32> to vector<1x8x16xf32>
    tpu.vector_store %arg4[%c0_62, %c0_63, %c80], %85 {strides = array<i32>} : memref<1x8x256xf32, #tpu.memory_space<vmem>>, vector<1x8x16xf32>,
    %86 = vector.extract_strided_slice %61 {offsets = [0, 108], sizes = [8, 16], strides = [1, 1]} : vector<8x288xf32> to vector<8x16xf32>
    %c0_64 = arith.constant 0 : index
    %c0_65 = arith.constant 0 : index
    %c96 = arith.constant 96 : index
    %87 = vector.load %arg4[%c0_64, %c0_65, %c96] : memref<1x8x256xf32, #tpu.memory_space<vmem>>, vector<1x8x16xf32>
    %88 = vector.shape_cast %87 : vector<1x8x16xf32> to vector<8x16xf32>
    %89 = vector.shape_cast %86 : vector<8x16xf32> to vector<1x8x16xf32>
    tpu.vector_store %arg4[%c0_64, %c0_65, %c96], %89 {strides = array<i32>} : memref<1x8x256xf32, #tpu.memory_space<vmem>>, vector<1x8x16xf32>,
    %90 = vector.extract_strided_slice %61 {offsets = [0, 126], sizes = [8, 16], strides = [1, 1]} : vector<8x288xf32> to vector<8x16xf32>
    %c0_66 = arith.constant 0 : index
    %c0_67 = arith.constant 0 : index
    %c112 = arith.constant 112 : index
    %91 = vector.load %arg4[%c0_66, %c0_67, %c112] : memref<1x8x256xf32, #tpu.memory_space<vmem>>, vector<1x8x16xf32>
    %92 = vector.shape_cast %91 : vector<1x8x16xf32> to vector<8x16xf32>
    %93 = vector.shape_cast %90 : vector<8x16xf32> to vector<1x8x16xf32>
    tpu.vector_store %arg4[%c0_66, %c0_67, %c112], %93 {strides = array<i32>} : memref<1x8x256xf32, #tpu.memory_space<vmem>>, vector<1x8x16xf32>,
    %94 = vector.extract_strided_slice %61 {offsets = [0, 144], sizes = [8, 16], strides = [1, 1]} : vector<8x288xf32> to vector<8x16xf32>
    %c0_68 = arith.constant 0 : index
    %c0_69 = arith.constant 0 : index
    %c128 = arith.constant 128 : index
    %95 = vector.load %arg4[%c0_68, %c0_69, %c128] : memref<1x8x256xf32, #tpu.memory_space<vmem>>, vector<1x8x16xf32>
    %96 = vector.shape_cast %95 : vector<1x8x16xf32> to vector<8x16xf32>
    %97 = vector.shape_cast %94 : vector<8x16xf32> to vector<1x8x16xf32>
    tpu.vector_store %arg4[%c0_68, %c0_69, %c128], %97 {strides = array<i32>} : memref<1x8x256xf32, #tpu.memory_space<vmem>>, vector<1x8x16xf32>,
    %98 = vector.extract_strided_slice %61 {offsets = [0, 162], sizes = [8, 16], strides = [1, 1]} : vector<8x288xf32> to vector<8x16xf32>
    %c0_70 = arith.constant 0 : index
    %c0_71 = arith.constant 0 : index
    %c144 = arith.constant 144 : index
    %99 = vector.load %arg4[%c0_70, %c0_71, %c144] : memref<1x8x256xf32, #tpu.memory_space<vmem>>, vector<1x8x16xf32>
    %100 = vector.shape_cast %99 : vector<1x8x16xf32> to vector<8x16xf32>
    %101 = vector.shape_cast %98 : vector<8x16xf32> to vector<1x8x16xf32>
    tpu.vector_store %arg4[%c0_70, %c0_71, %c144], %101 {strides = array<i32>} : memref<1x8x256xf32, #tpu.memory_space<vmem>>, vector<1x8x16xf32>,
    %102 = vector.extract_strided_slice %61 {offsets = [0, 180], sizes = [8, 16], strides = [1, 1]} : vector<8x288xf32> to vector<8x16xf32>
    %c0_72 = arith.constant 0 : index
    %c0_73 = arith.constant 0 : index
    %c160 = arith.constant 160 : index
    %103 = vector.load %arg4[%c0_72, %c0_73, %c160] : memref<1x8x256xf32, #tpu.memory_space<vmem>>, vector<1x8x16xf32>
    %104 = vector.shape_cast %103 : vector<1x8x16xf32> to vector<8x16xf32>
    %105 = vector.shape_cast %102 : vector<8x16xf32> to vector<1x8x16xf32>
    tpu.vector_store %arg4[%c0_72, %c0_73, %c160], %105 {strides = array<i32>} : memref<1x8x256xf32, #tpu.memory_space<vmem>>, vector<1x8x16xf32>,
    %106 = vector.extract_strided_slice %61 {offsets = [0, 198], sizes = [8, 16], strides = [1, 1]} : vector<8x288xf32> to vector<8x16xf32>
    %c0_74 = arith.constant 0 : index
    %c0_75 = arith.constant 0 : index
    %c176 = arith.constant 176 : index
    %107 = vector.load %arg4[%c0_74, %c0_75, %c176] : memref<1x8x256xf32, #tpu.memory_space<vmem>>, vector<1x8x16xf32>
    %108 = vector.shape_cast %107 : vector<1x8x16xf32> to vector<8x16xf32>
    %109 = vector.shape_cast %106 : vector<8x16xf32> to vector<1x8x16xf32>
    tpu.vector_store %arg4[%c0_74, %c0_75, %c176], %109 {strides = array<i32>} : memref<1x8x256xf32, #tpu.memory_space<vmem>>, vector<1x8x16xf32>,
    %110 = vector.extract_strided_slice %61 {offsets = [0, 216], sizes = [8, 16], strides = [1, 1]} : vector<8x288xf32> to vector<8x16xf32>
    %c0_76 = arith.constant 0 : index
    %c0_77 = arith.constant 0 : index
    %c192 = arith.constant 192 : index
    %111 = vector.load %arg4[%c0_76, %c0_77, %c192] : memref<1x8x256xf32, #tpu.memory_space<vmem>>, vector<1x8x16xf32>
    %112 = vector.shape_cast %111 : vector<1x8x16xf32> to vector<8x16xf32>
    %113 = vector.shape_cast %110 : vector<8x16xf32> to vector<1x8x16xf32>
    tpu.vector_store %arg4[%c0_76, %c0_77, %c192], %113 {strides = array<i32>} : memref<1x8x256xf32, #tpu.memory_space<vmem>>, vector<1x8x16xf32>,
    %114 = vector.extract_strided_slice %61 {offsets = [0, 234], sizes = [8, 16], strides = [1, 1]} : vector<8x288xf32> to vector<8x16xf32>
    %c0_78 = arith.constant 0 : index
    %c0_79 = arith.constant 0 : index
    %c208 = arith.constant 208 : index
    %115 = vector.load %arg4[%c0_78, %c0_79, %c208] : memref<1x8x256xf32, #tpu.memory_space<vmem>>, vector<1x8x16xf32>
    %116 = vector.shape_cast %115 : vector<1x8x16xf32> to vector<8x16xf32>
    %117 = vector.shape_cast %114 : vector<8x16xf32> to vector<1x8x16xf32>
    tpu.vector_store %arg4[%c0_78, %c0_79, %c208], %117 {strides = array<i32>} : memref<1x8x256xf32, #tpu.memory_space<vmem>>, vector<1x8x16xf32>,
    %118 = vector.extract_strided_slice %61 {offsets = [0, 252], sizes = [8, 16], strides = [1, 1]} : vector<8x288xf32> to vector<8x16xf32>
    %c0_80 = arith.constant 0 : index
    %c0_81 = arith.constant 0 : index
    %c224 = arith.constant 224 : index
    %119 = vector.load %arg4[%c0_80, %c0_81, %c224] : memref<1x8x256xf32, #tpu.memory_space<vmem>>, vector<1x8x16xf32>
    %120 = vector.shape_cast %119 : vector<1x8x16xf32> to vector<8x16xf32>
    %121 = vector.shape_cast %118 : vector<8x16xf32> to vector<1x8x16xf32>
    tpu.vector_store %arg4[%c0_80, %c0_81, %c224], %121 {strides = array<i32>} : memref<1x8x256xf32, #tpu.memory_space<vmem>>, vector<1x8x16xf32>,
    %122 = vector.extract_strided_slice %61 {offsets = [0, 270], sizes = [8, 16], strides = [1, 1]} : vector<8x288xf32> to vector<8x16xf32>
    %c0_82 = arith.constant 0 : index
    %c0_83 = arith.constant 0 : index
    %c240 = arith.constant 240 : index
    %123 = vector.load %arg4[%c0_82, %c0_83, %c240] : memref<1x8x256xf32, #tpu.memory_space<vmem>>, vector<1x8x16xf32>
    %124 = vector.shape_cast %123 : vector<1x8x16xf32> to vector<8x16xf32>
    %125 = vector.shape_cast %122 : vector<8x16xf32> to vector<1x8x16xf32>
    tpu.vector_store %arg4[%c0_82, %c0_83, %c240], %125 {strides = array<i32>} : memref<1x8x256xf32, #tpu.memory_space<vmem>>, vector<1x8x16xf32>,
    return
  }
  func.func @transform_0(%arg0: i32) -> (i32, i32, i32) {
    %c0_i32 = arith.constant 0 : i32
    %c0_i32_0 = arith.constant 0 : i32
    %c0_i32_1 = arith.constant 0 : i32
    return %arg0, %c0_i32, %c0_i32_0 : i32, i32, i32
  }
  func.func @transform_1(%arg0: i32) -> (i32, i32, i32) {
    %c0_i32 = arith.constant 0 : i32
    %c0_i32_0 = arith.constant 0 : i32
    %c0_i32_1 = arith.constant 0 : i32
    %c0_i32_2 = arith.constant 0 : i32
    return %c0_i32, %c0_i32_0, %c0_i32_1 : i32, i32, i32
  }
  func.func @transform_2(%arg0: i32) -> (i32, i32) {
    %c0_i32 = arith.constant 0 : i32
    %c0_i32_0 = arith.constant 0 : i32
    %c0_i32_1 = arith.constant 0 : i32
    return %c0_i32, %c0_i32_0 : i32, i32
  }
  func.func @transform_3(%arg0: i32) -> (i32, i32, i32) {
    %c0_i32 = arith.constant 0 : i32
    %c0_i32_0 = arith.constant 0 : i32
    %c0_i32_1 = arith.constant 0 : i32
    return %arg0, %c0_i32, %c0_i32_0 : i32, i32, i32
  }
}

</mosaic_0001>

<bundles_post_ra>
// kernel: conv_act.1
= control target key start
LH: loop header
LB: loop body
LE: loop exit
PB: predicated region body
PF: predicated region fallthrough
CT: control target
= control target key end

     0   :  { %s1639_s12 = smov 0   ;;  %s1862_s0 = inlined_call_operand.vmem [shape: bf16[2,4,342], index: 0, kind: input, shape index: {}]   ;;  %s1863_s1 = inlined_call_operand.vmem [shape: bf16[9,8,4], index: 1, kind: input, shape index: {}]   ;;  %s1864_s2 = inlined_call_operand.vmem [shape: f32[8,1], index: 2, kind: input, shape index: {}]   ;;  %s1865_s3 = inlined_call_operand.vmem [shape: f32[2,8,256], index: 3, kind: output, shape index: {}]  }
   0x1 LB: > { %s1421_s13 = sadd.s32 4294967295, %s1593_s12   ;;  %p1425_p0 = scmp.ge.s32.totalorder %s1593_s12, 1  ;;  %s1593_s12 = sphi %s1639_s12, %s13_s12  }
   0x2   : > { %p137_p1 = scmp.lt.s32.totalorder %s1593_s12, 3 }
   0x4   : > { %p138_p2 = pnand %p1425_p0, %p137_p1 }
   0x5   : > { %p161_p3 = scmp.lt.s32.totalorder (!%p138_p2), %s1421_s13, 1  ;;  %s1599_s18 = smov (!%p138_p2), 127  }
   0x6   : > { %141 = sbr.rel (%p138_p2) target bundleno = 574 (0x23e), region = 32  ;;  %s1600_s19 = smov (!%p138_p2), 126  }
   0x7   : > { %s1601_s20 = smov (!%p138_p2), 110   ;;  %s1602_s21 = smov (!%p138_p2), 109  }
   0x8   : > { %s1603_s22 = smov (!%p138_p2), 108   ;;  %s1604_s23 = smov (!%p138_p2), 92  }
   0x9   : > { %s1605_s24 = smov (!%p138_p2), 91   ;;  %s1606_s25 = smov (!%p138_p2), 90  }
   0xa   : > { %s1607_s28 = smov (!%p138_p2), 100   ;;  %s1608_s29 = smov (!%p138_p2), 114  }
   0xb   : > { %v181_v0 = vlaneseq  ;;  %v1595_v1 = vmov 1983009808   ;;  %v1596_v3 = vmov 0.0   ;;  %s1867_s13 = smov (!%p161_p3, %s1421_s13), 1  ;;  %vm1597_vm0 = vmmov 0   ;;  %v1265_v48 = vld [vmem:[%s1864_s2] sm:$0xff] }
   0xc   : > { %v179_v2 = vunpack.c.l.s4 %v1595_v1  ;;  %1485 = vmatprep.subr.bf16.mxu1 %v1596_v3  ;;  %1487 = vmatprep.mubr.msk.bf16.mxu1 %vm1597_vm0, %v1596_v3  ;;  %s1539_s14 = smul.u32 6, %s1867_s13  ;;  %v1598_v6 = vmov 0   ;;  %vm206_vm1 = vcmask 1041408   ;;  %vm199_vm2 = vcmask 1039360   ;;  %v1429_v53 = vld [vmem:[%s1863_s1 + $0x4] sm:$0xf] }
   0xd   : > { %v182_v4 = vshrl.u32 %v181_v0, 7  ;;  %248 = vmatprep.mubr.bf16.mxu0 %v1598_v6  ;;  %1572 = vset.pattern.permute.xlu0 %v1598_v6  ;;  %vm202_vm3 = vcmask 31744   ;;  %vm416_vm4 = vcmask 1031168   ;;  %v173_v63 = vld [vmem:[%s1863_s1] sm:$0xf]  ;;  %vm541_vm5 = vcmask 900096  }
   0xe   : > { %v180_v5 = vunpack.c.0.s8 %v179_v2  ;;  %s1660_s17 = scalar_lea.vmem %s1862_s0, %s1539_s14  ;;  %vm666_vm6 = vcmask 891904   ;;  %vm791_vm7 = vcmask 883712   ;;  %vm916_vm8 = vcmask 752640   ;;  %s1610_s30 = smov 122  }
   0xf   : > { %v172_v8 = vld [vmem:[%s1660_s17] sm:$0x3f]  ;;  %vm1041_vm9 = vcmask 744448   ;;  %vm1166_vm10 = vcmask 736256   ;;  %vm1286_vm11 = vcmask 130048   ;;  %s1611_s4 = smov 120  }
  0x10   : > { %v1655_v7 = vsub.s32 %v180_v5, %v182_v4  ;;  %v177_v10 = vcombine.high %v172_v8, %v172_v8  ;;  %v390_v11 = vld [vmem:[%s1660_s17] sm:$0x3f]  ;;  %s1612_s5 = smov 106   ;;  %s1613_s6 = smov 118   ;;  %vm1292_vm12 = vcmask 261248   ;;  %vm1297_vm13 = vcmask 392448  }
  0x11   : > { %v394_v15 = vcombine.high %v390_v11, %v390_v11  ;;  %v515_v17 = vld [vmem:[%s1660_s17] sm:$0x3f]  ;;  %s1615_s7 = smov 116   ;;  %s1616_s8 = smov 102   ;;  %vm1302_vm14 = vcmask 523648   ;;  %vm1307_vm15 = vcmask 654848  }
  0x12   : > { %v1664_v9 = vrot.slane %v172_v8, %v1655_v7  ;;  %v1669_v12 = vrot.slane %v177_v10, %v1655_v7  ;;  %v401_v14 = vrot.slane %v390_v11, %v1655_v7  ;;  %v526_v19 = vrot.slane %v515_v17, %v1655_v7  ;;  %v640_v22 = vld [vmem:[%s1660_s17] sm:$0x3f]  ;;  %v1436_v10 = vld [vmem:[%s1863_s1 + $0x8] sm:$0xf]  ;;  %s1617_s9 = smov 112  }
  0x13   : > { %v408_v18 = vrot.slane %v394_v15, %v1655_v7  ;;  %v519_v20 = vcombine.high %v515_v17, %v515_v17  ;;  %v651_v24 = vrot.slane %v640_v22, %v1655_v7  ;;  %v644_v25 = vcombine.high %v640_v22, %v640_v22  ;;  %v765_v27 = vld [vmem:[%s1660_s17] sm:$0x3f] }
  0x14   : > { %193 = vrot.lane.b32.xlu0 %v1664_v9, %s1599_s18  ;;  %v1673_v13 = vcombine.high %v1664_v9, %v1664_v9  ;;  %197 = vrot.lane.b32.xlu1 %v1669_v12, %s1599_s18  ;;  %v409_v16 = vcombine.high %v401_v14, %v401_v14  ;;  %v534_v21 = vcombine.high %v526_v19, %v526_v19  ;;  %v890_v32 = vld [vmem:[%s1660_s17] sm:$0x3f]  ;;  %v307_v56 = vsel %vm206_vm1, %v1669_v12, 0 }
  0x15   : > { %v533_v23 = vrot.slane %v519_v20, %v1655_v7  ;;  %v659_v26 = vcombine.high %v651_v24, %v651_v24  ;;  %v658_v28 = vrot.slane %v644_v25, %v1655_v7  ;;  %v776_v29 = vrot.slane %v765_v27, %v1655_v7  ;;  %v1015_v37 = vld [vmem:[%s1660_s17] sm:$0x3f] }
  0x16   : > { %v769_v30 = vcombine.high %v765_v27, %v765_v27  ;;  %v901_v34 = vrot.slane %v890_v32, %v1655_v7  ;;  %v894_v35 = vcombine.high %v890_v32, %v890_v32  ;;  %v1026_v39 = vrot.slane %v1015_v37, %v1655_v7  ;;  %v1140_v42 = vld [vmem:[%s1660_s17] sm:$0x3f]  ;;  %v1444_v27 = vld [vmem:[%s1863_s1 + $0x10] sm:$0xf] }
  0x17   : > { %v784_v31 = vcombine.high %v776_v29, %v776_v29  ;;  %v1019_v40 = vcombine.high %v1015_v37, %v1015_v37  ;;  %v1151_v44 = vrot.slane %v1140_v42, %v1655_v7  ;;  %v1144_v45 = vcombine.high %v1140_v42, %v1140_v42  ;;  %v1452_v42 = vld [vmem:[%s1863_s1 + $0x18] sm:$0xf] }
  0x18   : > { %195 = vrot.lane.b32.xlu0 %v1673_v13, %s1599_s18  ;;  %410 = vrot.lane.b32.xlu1 %v401_v14, %s1600_s19  ;;  %v783_v33 = vrot.slane %v769_v30, %v1655_v7  ;;  %v909_v36 = vcombine.high %v901_v34, %v901_v34  ;;  %v908_v38 = vrot.slane %v894_v35, %v1655_v7  ;;  %v301_v59 = vsel %vm206_vm1, %v1664_v9, 0  ;;  %v1448_v35 = vld [vmem:[%s1863_s1 + $0x14] sm:$0xf] }
  0x19   : > { %v1034_v41 = vcombine.high %v1026_v39, %v1026_v39  ;;  %v1033_v43 = vrot.slane %v1019_v40, %v1655_v7  ;;  %v1159_v46 = vcombine.high %v1151_v44, %v1151_v44  ;;  %v1158_v47 = vrot.slane %v1144_v45, %v1655_v7 }
  0x1c   : > { %412 = vrot.lane.b32.xlu0 %v409_v16, %s1600_s19  ;;  %414 = vrot.lane.b32.xlu1 %v408_v18, %s1600_s19 }
  0x20   : > { %535 = vrot.lane.b32.xlu0 %v526_v19, %s1601_s20  ;;  %537 = vrot.lane.b32.xlu1 %v534_v21, %s1601_s20  ;;  %v1440_v19 = vld [vmem:[%s1863_s1 + $0xc] sm:$0xf] }
  0x24   : > { %539 = vrot.lane.b32.xlu0 %v533_v23, %s1601_s20  ;;  %660 = vrot.lane.b32.xlu1 %v651_v24, %s1602_s21 }
  0x28   : > { %662 = vrot.lane.b32.xlu0 %v659_v26, %s1602_s21  ;;  %664 = vrot.lane.b32.xlu1 %v658_v28, %s1602_s21 }
  0x2c   : > { %785 = vrot.lane.b32.xlu0 %v776_v29, %s1603_s22  ;;  %787 = vrot.lane.b32.xlu1 %v784_v31, %s1603_s22 }
  0x30   : > { %789 = vrot.lane.b32.xlu0 %v783_v33, %s1603_s22  ;;  %910 = vrot.lane.b32.xlu1 %v901_v34, %s1604_s23 }
  0x34   : > { %912 = vrot.lane.b32.xlu0 %v909_v36, %s1604_s23  ;;  %914 = vrot.lane.b32.xlu1 %v908_v38, %s1604_s23 }
  0x38   : > { %1035 = vrot.lane.b32.xlu0 %v1026_v39, %s1605_s24  ;;  %1037 = vrot.lane.b32.xlu1 %v1034_v41, %s1605_s24 }
  0x3c   : > { %1039 = vrot.lane.b32.xlu0 %v1033_v43, %s1605_s24  ;;  %1160 = vrot.lane.b32.xlu1 %v1151_v44, %s1606_s25  ;;  %s1466_s24 = sshll.u32 %s1867_s13, 4  ;;  %s1609_s13 = smov 124  }
  0x3d   : > { %s1822_s27 = scalar_lea.vmem %s1865_s3, %s1466_s24 }
  0x40   : > { %1162 = vrot.lane.b32.xlu0 %v1159_v46, %s1606_s25  ;;  %1164 = vrot.lane.b32.xlu1 %v1158_v47, %s1606_s25 }
  0x44   : > { %1268 = vperm.xlu0 %1572, %v1265_v48  }
  0x86   : > { %v194_v49 = vpop.permute.xlu0 %193  ;;  %v198_v50 = vpop.permute.xlu1 %197 }
  0x87   : > { %v214_v51 = vsel %vm206_vm1, %v198_v50, 0 }
  0x88   : > { %1486 = vmatpush3.bf16.msra.mxu1 %v214_v51 }
  0x89   : > { %1491 = vmatprep.subr.bf16.mxu1 %v1596_v3 }
  0x8a   : > { %v196_v52 = vpop.permute.xlu0 %195  ;;  %v411_v58 = vpop.permute.xlu1 %410 }
  0x8b   : > { %v201_v54 = vsel %vm199_vm2, %v196_v52, %v198_v50  ;;  %v200_v55 = vsel %vm199_vm2, %v194_v49, %v196_v52  ;;  %1488 = vmatmul.mubr.msk.bf16.vlgmr.msra.gmra.mxu1 %vm202_vm3, %v1429_v53  ;;  %v1456_v49 = vld [vmem:[%s1863_s1 + $0x1c] sm:$0xf]  ;;  %vm1358_vm2 = vcmask 818176  }
  0x8c   : > { %1430 = vmatprep.subr.msk.bf16.mxu0 %vm206_vm1, %v201_v54  ;;  %v208_v57 = vsel %vm206_vm1, %v200_v55, 0  ;;  %1492 = vmatpush3.bf16.msra.mxu1 %v307_v56 }
  0x8d   : > { %231 = vmatpush1.bf16.msra.mxu0 %v208_v57  ;;  %1493 = vmatprep.mubr.msk.bf16.mxu1 %vm1597_vm0, %v1596_v3 }
  0x8e   : > { %1433 = vmatprep.subr.msk.bf16.mxu0 %vm206_vm1, %v1673_v13  ;;  %v413_v60 = vpop.permute.xlu0 %412  ;;  %1497 = vmatprep.subr.bf16.mxu1 %v1596_v3  ;;  %v415_v61 = vpop.permute.xlu1 %414 }
  0x8f   : > { %v418_v62 = vsel %vm416_vm4, %v413_v60, %v415_v61  ;;  %v417_v1 = vsel %vm416_vm4, %v411_v58, %v413_v60  ;;  %v429_v2 = vsel %vm206_vm1, %v415_v61, 0  ;;  %vm1324_vm4 = vcmask 932864  }
  0x90   : > { %1431 = vmatmul.mubr.msk.bf16.vlgmr.msra.gmra.mxu0 %vm202_vm3, %v1429_v53  ;;  %v423_v5 = vsel %vm206_vm1, %v417_v1, 0  ;;  %v1460_v53 = vld [vmem:[%s1863_s1 + $0x20] sm:$0xf] }
  0x91   : > { %324 = vmatpush1.bf16.msra.mxu0 %v301_v59  ;;  %341 = vmatprep.mubr.bf16.mxu0 %v1598_v6 }
  0x92   : > { %1437 = vmatprep.subr.msk.bf16.mxu0 %vm206_vm1, %v418_v62  ;;  %v536_v0 = vpop.permute.xlu0 %535  ;;  %v538_v4 = vpop.permute.xlu1 %537 }
  0x93   : > { %1494 = vmatmul.mubr.msk.bf16.vlgmr.msra.gmra.mxu1 %vm202_vm3, %v173_v63  ;;  %v542_v12 = vsel %vm541_vm5, %v536_v0, %v538_v4 }
  0x94   : > { %1498 = vmatpush3.bf16.msra.mxu1 %v429_v2  ;;  %1499 = vmatprep.mubr.msk.bf16.mxu1 %vm1597_vm0, %v1596_v3  ;;  %v548_v15 = vsel %vm206_vm1, %v542_v12, 0 }
  0x95   : > { %1503 = vmatprep.subr.bf16.mxu1 %v1596_v3 }
  0x96   : > { %v540_v7 = vpop.permute.xlu0 %539  ;;  %v661_v9 = vpop.permute.xlu1 %660 }
  0x97   : > { %v543_v8 = vsel %vm541_vm5, %v538_v4, %v540_v7  ;;  %v554_v13 = vsel %vm206_vm1, %v540_v7, 0 }
  0x98   : > { %1434 = vmatmul.mubr.msk.bf16.vlgmr.msra.gmra.mxu0 %vm202_vm3, %v173_v63 }
  0x99   : > { %446 = vmatpush1.bf16.msra.mxu0 %v423_v5  ;;  %463 = vmatprep.mubr.bf16.mxu0 %v1598_v6 }
  0x9a   : > { %1441 = vmatprep.subr.msk.bf16.mxu0 %vm206_vm1, %v543_v8  ;;  %v663_v11 = vpop.permute.xlu0 %662  ;;  %v665_v14 = vpop.permute.xlu1 %664 }
  0x9b   : > { %1500 = vmatmul.mubr.msk.bf16.vlgmr.msra.gmra.mxu1 %vm202_vm3, %v1436_v10  ;;  %v668_v17 = vsel %vm666_vm6, %v663_v11, %v665_v14  ;;  %v667_v20 = vsel %vm666_vm6, %v661_v9, %v663_v11  ;;  %v679_v21 = vsel %vm206_vm1, %v665_v14, 0 }
  0x9c   : > { %1504 = vmatpush3.bf16.msra.mxu1 %v554_v13  ;;  %1505 = vmatprep.mubr.msk.bf16.mxu1 %vm1597_vm0, %v1596_v3  ;;  %v673_v23 = vsel %vm206_vm1, %v667_v20, 0 }
  0x9d   : > { %1509 = vmatprep.subr.bf16.mxu1 %v1596_v3 }
  0x9e   : > { %v786_v16 = vpop.permute.xlu0 %785  ;;  %v788_v18 = vpop.permute.xlu1 %787 }
  0x9f   : > { %v792_v28 = vsel %vm791_vm7, %v786_v16, %v788_v18 }
  0xa0   : > { %1438 = vmatmul.mubr.msk.bf16.vlgmr.msra.gmra.mxu0 %vm202_vm3, %v1436_v10  ;;  %v798_v31 = vsel %vm206_vm1, %v792_v28, 0 }
  0xa1   : > { %571 = vmatpush1.bf16.msra.mxu0 %v548_v15  ;;  %588 = vmatprep.mubr.bf16.mxu0 %v1598_v6 }
  0xa2   : > { %1445 = vmatprep.subr.msk.bf16.mxu0 %vm206_vm1, %v668_v17  ;;  %v790_v22 = vpop.permute.xlu0 %789  ;;  %v911_v24 = vpop.permute.xlu1 %910 }
  0xa3   : > { %1506 = vmatmul.mubr.msk.bf16.vlgmr.msra.gmra.mxu1 %vm202_vm3, %v1440_v19  ;;  %v793_v25 = vsel %vm791_vm7, %v788_v18, %v790_v22  ;;  %v804_v29 = vsel %vm206_vm1, %v790_v22, 0 }
  0xa4   : > { %1510 = vmatpush3.bf16.msra.mxu1 %v679_v21  ;;  %1511 = vmatprep.mubr.msk.bf16.mxu1 %vm1597_vm0, %v1596_v3 }
  0xa5   : > { %1515 = vmatprep.subr.bf16.mxu1 %v1596_v3 }
  0xa6   : > { %v913_v26 = vpop.permute.xlu0 %912  ;;  %v915_v30 = vpop.permute.xlu1 %914 }
  0xa7   : > { %v918_v33 = vsel %vm916_vm8, %v913_v26, %v915_v30  ;;  %v917_v36 = vsel %vm916_vm8, %v911_v24, %v913_v26  ;;  %v929_v37 = vsel %vm206_vm1, %v915_v30, 0 }
  0xa8   : > { %1442 = vmatmul.mubr.msk.bf16.vlgmr.msra.gmra.mxu0 %vm202_vm3, %v1440_v19  ;;  %v923_v39 = vsel %vm206_vm1, %v917_v36, 0 }
  0xa9   : > { %696 = vmatpush1.bf16.msra.mxu0 %v673_v23  ;;  %713 = vmatprep.mubr.bf16.mxu0 %v1598_v6 }
  0xaa   : > { %1449 = vmatprep.subr.msk.bf16.mxu0 %vm206_vm1, %v793_v25  ;;  %v1036_v32 = vpop.permute.xlu0 %1035  ;;  %v1038_v34 = vpop.permute.xlu1 %1037 }
  0xab   : > { %1512 = vmatmul.mubr.msk.bf16.vlgmr.msra.gmra.mxu1 %vm202_vm3, %v1444_v27  ;;  %v1042_v43 = vsel %vm1041_vm9, %v1036_v32, %v1038_v34 }
  0xac   : > { %1516 = vmatpush3.bf16.msra.mxu1 %v804_v29  ;;  %1517 = vmatprep.mubr.msk.bf16.mxu1 %vm1597_vm0, %v1596_v3  ;;  %v1048_v47 = vsel %vm206_vm1, %v1042_v43, 0 }
  0xad   : > { %1521 = vmatprep.subr.bf16.mxu1 %v1596_v3 }
  0xae   : > { %v1040_v38 = vpop.permute.xlu0 %1039  ;;  %v1161_v40 = vpop.permute.xlu1 %1160 }
  0xaf   : > { %v1043_v41 = vsel %vm1041_vm9, %v1038_v34, %v1040_v38  ;;  %v1054_v44 = vsel %vm206_vm1, %v1040_v38, 0 }
  0xb0   : > { %1446 = vmatmul.mubr.msk.bf16.vlgmr.msra.gmra.mxu0 %vm202_vm3, %v1444_v27 }
  0xb1   : > { %821 = vmatpush1.bf16.msra.mxu0 %v798_v31  ;;  %838 = vmatprep.mubr.bf16.mxu0 %v1598_v6 }
  0xb2   : > { %1453 = vmatprep.subr.msk.bf16.mxu0 %vm206_vm1, %v918_v33  ;;  %v1163_v45 = vpop.permute.xlu0 %1162  ;;  %v1165_v46 = vpop.permute.xlu1 %1164 }
  0xb3   : > { %1518 = vmatmul.mubr.msk.bf16.vlgmr.msra.gmra.mxu1 %vm202_vm3, %v1448_v35  ;;  %v1168_v48 = vsel %vm1166_vm10, %v1163_v45, %v1165_v46  ;;  %v1167_v50 = vsel %vm1166_vm10, %v1161_v40, %v1163_v45  ;;  %v1179_v51 = vsel %vm206_vm1, %v1165_v46, 0 }
  0xb4   : > { %1522 = vmatpush3.bf16.msra.mxu1 %v929_v37  ;;  %1523 = vmatprep.mubr.msk.bf16.mxu1 %vm1597_vm0, %v1596_v3  ;;  %v1173_v52 = vsel %vm206_vm1, %v1167_v50, 0 }
  0xb5   : > { %1527 = vmatprep.subr.bf16.mxu1 %v1596_v3 }
  0xb8   : > { %1450 = vmatmul.mubr.msk.bf16.vlgmr.msra.gmra.mxu0 %vm202_vm3, %v1448_v35 }
  0xb9   : > { %946 = vmatpush1.bf16.msra.mxu0 %v923_v39  ;;  %963 = vmatprep.mubr.bf16.mxu0 %v1598_v6 }
  0xba   : > { %1457 = vmatprep.subr.msk.bf16.mxu0 %vm206_vm1, %v1043_v41 }
  0xbb   : > { %1524 = vmatmul.mubr.msk.bf16.vlgmr.msra.gmra.mxu1 %vm202_vm3, %v1452_v42 }
  0xbc   : > { %1528 = vmatpush3.bf16.msra.mxu1 %v1054_v44  ;;  %1529 = vmatprep.mubr.msk.bf16.mxu1 %vm1597_vm0, %v1596_v3 }
  0xbd   : > { %1533 = vmatprep.subr.bf16.mxu1 %v1596_v3 }
  0xc0   : > { %1454 = vmatmul.mubr.msk.bf16.vlgmr.msra.gmra.mxu0 %vm202_vm3, %v1452_v42 }
  0xc1   : > { %1071 = vmatpush1.bf16.msra.mxu0 %v1048_v47  ;;  %1088 = vmatprep.mubr.bf16.mxu0 %v1598_v6 }
  0xc2   : > { %1461 = vmatprep.subr.msk.bf16.mxu0 %vm206_vm1, %v1168_v48  ;;  %vm1317_vm1 = vcmask 917248  }
  0xc3   : > { %1530 = vmatmul.mubr.msk.bf16.vlgmr.msra.gmra.mxu1 %vm202_vm3, %v1456_v49 }
  0xc4   : > { %1534 = vmatpush3.bf16.msra.mxu1 %v1179_v51  ;;  %1535 = vmatprep.mubr.msk.bf16.mxu1 %vm1597_vm0, %v1596_v3  ;;  %vm1312_vm0 = vcmask 786048  }
  0xc8   : > { %1458 = vmatmul.mubr.msk.bf16.vlgmr.msra.gmra.mxu0 %vm202_vm3, %v1456_v49 }
  0xc9   : > { %1196 = vmatpush1.bf16.msra.mxu0 %v1173_v52  ;;  %1213 = vmatprep.mubr.bf16.mxu0 %v1598_v6 }
  0xcb   : > { %1536 = vmatmul.mubr.msk.bf16.vlgmr.msra.gmra.mxu1 %vm202_vm3, %v1460_v53 }
  0xd0   : > { %1462 = vmatmul.mubr.msk.bf16.vlgmr.msra.gmra.mxu0 %vm202_vm3, %v1460_v53  ;;  %vm1327_vm3 = vcmask 1048448  }
 0x14b   : > { %v291_v54 = vpop.f32.mrf.mxu1 }
 0x14d   : > { %v1489_v55 = vpop.f32.mrf.mxu1 }
 0x14f   : > { %v294_v57 = vpop.f32.mrf.mxu1 }
 0x150   : > { %v250_v56 = vpop.f32.mrf.mxu0 }
 0x151   : > { %v1490_v59 = vpop.f32.mrf.mxu1 }
 0x152   : > { %v252_v58 = vpop.f32.mrf.mxu0 }
 0x153   : > { %v384_v60 = vpop.f32.mrf.mxu1 }
 0x154   : > { %v254_v3 = vpop.f32.mrf.mxu0  ;;  %v385_v40 = vadd.f32 %v384_v60, %v291_v54 }
 0x155   : > { %v1495_v62 = vpop.f32.mrf.mxu1 }
 0x156   : > { %v255_v61 = vpop.f32.mrf.mxu0 }
 0x157   : > { %v387_v6 = vpop.f32.mrf.mxu1 }
 0x158   : > { %v343_v63 = vpop.f32.mrf.mxu0 }
 0x159   : > { %v1496_v1 = vpop.f32.mrf.mxu1  ;;  %v344_v45 = vadd.f32 %v343_v63, %v250_v56 }
 0x15a   : > { %v345_v0 = vpop.f32.mrf.mxu0 }
 0x15b   : > { %v506_v4 = vpop.f32.mrf.mxu1  ;;  %v346_v49 = vadd.f32 %v345_v0, %v252_v58 }
 0x15c   : > { %v347_v2 = vpop.f32.mrf.mxu0  ;;  %v514_v43 = vadd.f32 %v506_v4, %v385_v40 }
 0x15d   : > { %v1501_v7 = vpop.f32.mrf.mxu1 }
 0x15e   : > { %v348_v5 = vpop.f32.mrf.mxu0 }
 0x15f   : > { %v509_v9 = vpop.f32.mrf.mxu1 }
 0x160   : > { %v465_v8 = vpop.f32.mrf.mxu0 }
 0x161   : > { %v1502_v11 = vpop.f32.mrf.mxu1  ;;  %v512_v50 = vadd.f32 %v465_v8, %v344_v45  ;;  %v1269_v8 = vpop.permute.xlu0 %1268 }
 0x162   : > { %v467_v10 = vpop.f32.mrf.mxu0 }
 0x163   : > { %v631_v13 = vpop.f32.mrf.mxu1  ;;  %v513_v55 = vadd.f32 %v467_v10, %v346_v49 }
 0x164   : > { %v469_v12 = vpop.f32.mrf.mxu0  ;;  %v639_v47 = vadd.f32 %v631_v13, %v514_v43 }
 0x165   : > { %v1507_v15 = vpop.f32.mrf.mxu1 }
 0x166   : > { %v470_v14 = vpop.f32.mrf.mxu0 }
 0x167   : > { %v634_v17 = vpop.f32.mrf.mxu1 }
 0x168   : > { %v590_v16 = vpop.f32.mrf.mxu0 }
 0x169   : > { %v1508_v19 = vpop.f32.mrf.mxu1  ;;  %v637_v57 = vadd.f32 %v590_v16, %v512_v50 }
 0x16a   : > { %v592_v18 = vpop.f32.mrf.mxu0 }
 0x16b   : > { %v756_v21 = vpop.f32.mrf.mxu1  ;;  %v638_v62 = vadd.f32 %v592_v18, %v513_v55 }
 0x16c   : > { %v594_v20 = vpop.f32.mrf.mxu0  ;;  %v764_v52 = vadd.f32 %v756_v21, %v639_v47 }
 0x16d   : > { %v1513_v23 = vpop.f32.mrf.mxu1 }
 0x16e   : > { %v595_v22 = vpop.f32.mrf.mxu0 }
 0x16f   : > { %v759_v25 = vpop.f32.mrf.mxu1 }
 0x170   : > { %v715_v24 = vpop.f32.mrf.mxu0 }
 0x171   : > { %v1514_v27 = vpop.f32.mrf.mxu1  ;;  %v762_v54 = vadd.f32 %v715_v24, %v637_v57 }
 0x172   : > { %v717_v26 = vpop.f32.mrf.mxu0 }
 0x173   : > { %v881_v29 = vpop.f32.mrf.mxu1  ;;  %v763_v2 = vadd.f32 %v717_v26, %v638_v62 }
 0x174   : > { %v719_v28 = vpop.f32.mrf.mxu0  ;;  %v889_v3 = vadd.f32 %v881_v29, %v764_v52 }
 0x175   : > { %v1519_v31 = vpop.f32.mrf.mxu1 }
 0x176   : > { %v720_v30 = vpop.f32.mrf.mxu0 }
 0x177   : > { %v884_v33 = vpop.f32.mrf.mxu1 }
 0x178   : > { %v840_v32 = vpop.f32.mrf.mxu0 }
 0x179   : > { %v1520_v35 = vpop.f32.mrf.mxu1  ;;  %v887_v56 = vadd.f32 %v840_v32, %v762_v54 }
 0x17a   : > { %v842_v34 = vpop.f32.mrf.mxu0 }
 0x17b   : > { %v1006_v37 = vpop.f32.mrf.mxu1  ;;  %v888_v58 = vadd.f32 %v842_v34, %v763_v2 }
 0x17c   : > { %v844_v36 = vpop.f32.mrf.mxu0  ;;  %v1014_v6 = vadd.f32 %v1006_v37, %v889_v3 }
 0x17d   : > { %v1525_v39 = vpop.f32.mrf.mxu1 }
 0x17e   : > { %v845_v38 = vpop.f32.mrf.mxu0 }
 0x17f   : > { %v1009_v42 = vpop.f32.mrf.mxu1 }
 0x180   : > { %v965_v41 = vpop.f32.mrf.mxu0 }
 0x181   : > { %v1526_v46 = vpop.f32.mrf.mxu1  ;;  %v1012_v0 = vadd.f32 %v965_v41, %v887_v56 }
 0x182   : > { %v967_v44 = vpop.f32.mrf.mxu0 }
 0x183   : > { %v1131_v51 = vpop.f32.mrf.mxu1  ;;  %v1013_v11 = vadd.f32 %v967_v44, %v888_v58 }
 0x184   : > { %v969_v48 = vpop.f32.mrf.mxu0  ;;  %v1139_v4 = vadd.f32 %v1131_v51, %v1014_v6 }
 0x185   : > { %v1531_v59 = vpop.f32.mrf.mxu1 }
 0x186   : > { %v970_v53 = vpop.f32.mrf.mxu0 }
 0x187   : > { %v1134_v60 = vpop.f32.mrf.mxu1 }
 0x188   : > { %v1090_v61 = vpop.f32.mrf.mxu0 }
 0x189   : > { %v1532_v63 = vpop.f32.mrf.mxu1  ;;  %v1137_v12 = vadd.f32 %v1090_v61, %v1012_v0 }
 0x18a   : > { %v1092_v1 = vpop.f32.mrf.mxu0 }
 0x18b   : > { %v1256_v7 = vpop.f32.mrf.mxu1  ;;  %v1138_v16 = vadd.f32 %v1092_v1, %v1013_v11 }
 0x18c   : > { %v1094_v5 = vpop.f32.mrf.mxu0  ;;  %v1264_v9 = vadd.f32 %v1256_v7, %v1139_v4 }
 0x18d   : > { %v1537_v13 = vpop.f32.mrf.mxu1 }
 0x18e   : > { %v1095_v10 = vpop.f32.mrf.mxu0  ;;  %v1273_v14 = vadd.f32 %v1269_v8, %v1264_v9 }
 0x18f   : > { %v1259_v18 = vpop.f32.mrf.mxu1 }
 0x190   : > { %v1215_v15 = vpop.f32.mrf.mxu0  ;;  %v1276_v19 = vand.u32 2147483647, %v1273_v14 }
 0x191   : > { %v1262_v17 = vadd.f32 %v1215_v15, %v1137_v12  ;;  %v1538_v23 = vpop.f32.mrf.mxu1 }
 0x192   : > { %v1217_v20 = vpop.f32.mrf.mxu0  ;;  %v1279_v24 = vadd.f32 1.0, %v1276_v19 }
 0x193   : > { %v1271_v21 = vadd.f32 %v1269_v8, %v1262_v17  ;;  %v1263_v22 = vadd.f32 %v1217_v20, %v1138_v16 }
 0x194   : > { %v1219_v25 = vpop.f32.mrf.mxu0  ;;  %1581 = vrcp.f32 %v1279_v24 }
 0x195   : > { %v1274_v26 = vand.u32 2147483647, %v1271_v21  ;;  %v1272_v27 = vadd.f32 %v1269_v8, %v1263_v22 }
 0x196   : > { %v1220_v28 = vpop.f32.mrf.mxu0 }
 0x197   : > { %v1277_v29 = vadd.f32 1.0, %v1274_v26  ;;  %v1275_v30 = vand.u32 2147483647, %v1272_v27 }
 0x199   : > { %1583 = vrcp.f32 %v1277_v29  ;;  %v1278_v31 = vadd.f32 1.0, %v1275_v30 }
 0x19b   : > { %1585 = vrcp.f32 %v1278_v31 }
 0x1a1   : > { %v1582_v32 = vpop.eup %1581 }
 0x1a2   : > { %v1285_v33 = vmul.f32 %v1582_v32, %v1273_v14 }
 0x1a4   : > { %1356 = vrot.lane.b32.xlu0 %v1285_v33, %s1607_s28 }
 0x1a6   : > { %v1584_v34 = vpop.eup %1583 }
 0x1a7   : > { %v1281_v35 = vmul.f32 %v1584_v34, %v1271_v21 }
 0x1a8   : > { %v1586_v36 = vpop.eup %1585 }
 0x1a9   : > { %1289 = vrot.lane.b32.xlu1 %v1281_v35, %s1600_s19  ;;  %1287 = vst.msk [vmem:[%s1822_s27] sm:$0xff] %vm1286_vm11, %v1281_v35  ;;  %1320 = vrot.lane.b32.xlu0 %v1281_v35, %s1608_s29  ;;  %v1283_v37 = vmul.f32 %v1586_v36, %v1272_v27  ;;  %s1614_s19 = smov 104  }
 0x1ad   : > { %1294 = vrot.lane.b32.xlu1 %v1281_v35, %s1609_s13  ;;  %1333 = vrot.lane.b32.xlu0 %v1283_v37, %s1601_s20  ;;  %s1618_s20 = smov 98  }
 0x1b1   : > { %1299 = vrot.lane.b32.xlu1 %v1281_v35, %s1610_s30  ;;  %1337 = vrot.lane.b32.xlu0 %v1283_v37, %s1603_s22 }
 0x1b5   : > { %1304 = vrot.lane.b32.xlu1 %v1281_v35, %s1611_s4  ;;  %1341 = vrot.lane.b32.xlu0 %v1283_v37, %s1612_s5 }
 0x1b9   : > { %1309 = vrot.lane.b32.xlu1 %v1281_v35, %s1613_s6  ;;  %1345 = vrot.lane.b32.xlu0 %v1283_v37, %s1614_s19 }
 0x1bd   : > { %1314 = vrot.lane.b32.xlu1 %v1281_v35, %s1615_s7  ;;  %1349 = vrot.lane.b32.xlu0 %v1283_v37, %s1616_s8 }
 0x1c1   : > { %1329 = vrot.lane.b32.xlu1 %v1283_v37, %s1617_s9  ;;  %1362 = vrot.lane.b32.xlu0 %v1285_v33, %s1618_s20 }
 0x1c5   : > { %1354 = vrot.lane.b32.xlu1 %v1283_v37, %s1607_s28 }
 0x1c9   : > { %1322 = vrot.lane.b32.xlu1 %v1283_v37, %s1608_s29 }
 0x216   : > { %v1357_v38 = vpop.permute.xlu0 %1356 }
 0x21b   : > { %v1290_v39 = vpop.permute.xlu1 %1289  ;;  %v1321_v40 = vpop.permute.xlu0 %1320 }
 0x21c   : > { %1293 = vst.msk [vmem:[%s1822_s27] sm:$0xff] %vm1292_vm12, %v1290_v39 }
 0x21f   : > { %v1295_v41 = vpop.permute.xlu1 %1294  ;;  %v1334_v42 = vpop.permute.xlu0 %1333 }
 0x220   : > { %1298 = vst.msk [vmem:[%s1822_s27] sm:$0xff] %vm1297_vm13, %v1295_v41 }
 0x223   : > { %v1300_v43 = vpop.permute.xlu1 %1299  ;;  %v1338_v44 = vpop.permute.xlu0 %1337 }
 0x224   : > { %1303 = vst.msk [vmem:[%s1822_s27] sm:$0xff] %vm1302_vm14, %v1300_v43 }
 0x227   : > { %v1305_v45 = vpop.permute.xlu1 %1304  ;;  %v1342_v46 = vpop.permute.xlu0 %1341 }
 0x228   : > { %1308 = vst.msk [vmem:[%s1822_s27] sm:$0xff] %vm1307_vm15, %v1305_v45 }
 0x22b   : > { %v1310_v47 = vpop.permute.xlu1 %1309  ;;  %v1346_v48 = vpop.permute.xlu0 %1345 }
 0x22c   : > { %1313 = vst.msk [vmem:[%s1822_s27] sm:$0xff] %vm1312_vm0, %v1310_v47 }
 0x22f   : > { %v1315_v49 = vpop.permute.xlu1 %1314  ;;  %v1350_v51 = vpop.permute.xlu0 %1349 }
 0x230   : > { %1318 = vst.msk [vmem:[%s1822_s27] sm:$0xff] %vm1317_vm1, %v1315_v49 }
 0x233   : > { %v1330_v50 = vpop.permute.xlu1 %1329  ;;  %v1363_v55 = vpop.permute.xlu0 %1362 }
 0x234   : > { %1332 = vst.msk [vmem:[%s1822_s27 + $0x8] sm:$0xff] %vm1286_vm11, %v1330_v50 }
 0x235   : > { %1336 = vst.msk [vmem:[%s1822_s27 + $0x8] sm:$0xff] %vm1292_vm12, %v1334_v42 }
 0x236   : > { %1340 = vst.msk [vmem:[%s1822_s27 + $0x8] sm:$0xff] %vm1297_vm13, %v1338_v44 }
 0x237   : > { %1344 = vst.msk [vmem:[%s1822_s27 + $0x8] sm:$0xff] %vm1302_vm14, %v1342_v46  ;;  %v1355_v52 = vpop.permute.xlu1 %1354 }
 0x238   : > { %1348 = vst.msk [vmem:[%s1822_s27 + $0x8] sm:$0xff] %vm1307_vm15, %v1346_v48  ;;  %v1359_v53 = vsel %vm1358_vm2, %v1355_v52, %v1357_v38 }
 0x239   : > { %1352 = vst.msk [vmem:[%s1822_s27 + $0x8] sm:$0xff] %vm1312_vm0, %v1350_v51 }
 0x23a   : > { %1361 = vst.msk [vmem:[%s1822_s27 + $0x8] sm:$0xff] %vm1317_vm1, %v1359_v53 }
 0x23b   : > { %1365 = vst.msk [vmem:[%s1822_s27 + $0x8] sm:$0xff] %vm1327_vm3, %v1363_v55  ;;  %v1323_v57 = vpop.permute.xlu1 %1322 }
 0x23c   : > { %v1325_v59 = vsel %vm1324_vm4, %v1321_v40, %v1323_v57 }
 0x23d   : > { %1328 = vst.msk [vmem:[%s1822_s27] sm:$0xff] %vm1327_vm3, %v1325_v59 }
 0x23e PF: > { %s13_s12 = sadd.s32 1, %s1593_s12  }
 0x23f   : > { %p10_p4 = scmp.ge.s32.totalorder %s13_s12, 4  }
 0x241   :  { %12 = sbr.rel (!%p10_p4) target bundleno = 1 (0x1), region = 70 }

</bundles_post_ra>
